<compile_context>
chip_gen: v6e
topology: v6e:2x2x1
jax: 0.10.0
libtpu: 0.0.40
codegen_flags: <defaults>
</compile_context>

<pallas_src>
import math

import jax
import jax.numpy as jnp
from jax.experimental import pallas as pl
from jax.experimental.pallas import tpu as pltpu


def _make_pe(max_len: int, embed_size: int) -> jnp.ndarray:
    """Deterministic positional-encoding table, identical formula to the module."""
    position = jnp.arange(0, max_len, dtype=jnp.float32)[:, None]          # (L, 1)
    div_term = jnp.exp(
        jnp.arange(0, embed_size, 2, dtype=jnp.float32)
        * (-math.log(10000.0) / embed_size)
    )                                                                       # (E/2,)
    pe = jnp.zeros((max_len, embed_size), dtype=jnp.float32)
    pe = pe.at[:, 0::2].set(jnp.sin(position * div_term))
    pe = pe.at[:, 1::2].set(jnp.cos(position * div_term))
    return pe                                                               # (L, E)


def _add_pe_dropout_kernel(threshold: int, scale: float):
    """x + pe, then inverted dropout decided by an int32 threshold on random bits."""

    def kernel(x_ref, pe_ref, bits_ref, o_ref):
        y = x_ref[...] + pe_ref[...]
        keep = bits_ref[...] >= threshold          # signed-int32 compare, P(keep)=1-p
        o_ref[...] = jnp.where(keep, y * scale, 0.0).astype(o_ref.dtype)

    return kernel


def _add_pe_kernel(x_ref, pe_ref, o_ref):
    o_ref[...] = (x_ref[...] + pe_ref[...]).astype(o_ref.dtype)


def positional_encoding(x, pe, key=None, *, dropout_prob=0.1, training=True,
                        max_tile_rows=1024):
    """x: (B, S, E); pe: (max_len>=S, E); key: jax PRNG key (needed when training)."""
    B, S, E = x.shape
    assert pe.shape[0] >= S and pe.shape[1] == E
    pe_sl = pe[:S, :].astype(x.dtype)

    use_dropout = bool(training) and float(dropout_prob) > 0.0

    # ---- lane-dense flattening: view each (S, E) slab as (R, 128) ----------------
    LANE = 128
    N = S * E
    if N % LANE == 0:
        R, lane = N // LANE, LANE
        x2 = x.reshape(B, R, lane)
        pe2 = pe_sl.reshape(R, lane)
    else:
        # TODO(synk): pad E up to a multiple of 128 for unmasked stores; this fallback
        # keeps the natural (S, E) layout (correct, just lane-masked stores).
        R, lane = S, E
        x2, pe2 = x, pe_sl

    # ---- row tiling: whole slab if small, else a VMEM-friendly multiple of 8 -----
    if R <= max_tile_rows:
        TR = R
    else:
        TR = max(8, (max_tile_rows // 8) * 8)
    n_tiles = pl.cdiv(R, TR)

    grid = (n_tiles, B)  # batch innermost -> pe block index constant across inner loop
    x_spec = pl.BlockSpec((None, TR, lane), lambda t, b: (b, t, 0))
    pe_spec = pl.BlockSpec((TR, lane), lambda t, b: (t, 0))
    out_spec = pl.BlockSpec((None, TR, lane), lambda t, b: (b, t, 0))

    itemsize = jnp.dtype(x.dtype).itemsize
    n_elem = B * S * E

    if use_dropout:
        if key is None:
            raise ValueError("training dropout requires a PRNG key")
        p = float(dropout_prob)
        scale = 1.0 / (1.0 - p)
        # keep iff int32(bits) >= threshold  ==>  P(keep) = 1 - p  (bits uniform int32)
        threshold = int(round(p * 2.0 ** 32)) - 2 ** 31
        threshold = max(-(2 ** 31), min(2 ** 31 - 1, threshold))

        bits_u32 = jax.random.bits(key, x2.shape, dtype=jnp.uint32)
        bits = jax.lax.bitcast_convert_type(bits_u32, jnp.int32)

        kernel = _add_pe_dropout_kernel(threshold, scale)
        in_specs = [x_spec, pe_spec, x_spec]
        operands = (x2, pe2, bits)
        cost = pl.CostEstimate(
            flops=3 * n_elem,
            transcendentals=0,
            bytes_accessed=2 * n_elem * itemsize + n_elem * 4 + S * E * itemsize,
        )
    else:
        kernel = _add_pe_kernel
        in_specs = [x_spec, pe_spec]
        operands = (x2, pe2)
        cost = pl.CostEstimate(
            flops=n_elem,
            transcendentals=0,
            bytes_accessed=2 * n_elem * itemsize + S * E * itemsize,
        )

    out2 = pl.pallas_call(
        kernel,
        out_shape=jax.ShapeDtypeStruct(x2.shape, x.dtype),
        grid=grid,
        in_specs=in_specs,
        out_specs=out_spec,
        compiler_params=pltpu.CompilerParams(
            dimension_semantics=("parallel", "parallel"),
        ),
        cost_estimate=cost,
    )(*operands)

    return out2.reshape(B, S, E)


if __name__ == "__main__":
    # Small shapes consistent with the module: batch=2, seq=8 (<= max_len=40), embed=32.
    B, S, E = 2, 8, 32
    MAX_LEN = 40
    DROPOUT_P = 0.1

    root = jax.random.PRNGKey(0)
    k_x, k_drop = jax.random.split(root)
    x = jax.random.normal(k_x, (B, S, E), dtype=jnp.float32)
    pe = _make_pe(MAX_LEN, E)

    # Training-mode forward (fused add + inverted dropout).
    out_train = positional_encoding(x, pe, k_drop, dropout_prob=DROPOUT_P, training=True)
    out_train = jax.block_until_ready(out_train)

    # Eval-mode forward (dropout = identity) for an exact correctness check.
    out_eval = positional_encoding(x, pe, k_drop, dropout_prob=DROPOUT_P, training=False)
    out_eval = jax.block_until_ready(out_eval)

    ref = x + pe[:S][None, :, :]
    assert out_train.shape == (B, S, E)
    assert out_eval.shape == (B, S, E)
    assert jnp.allclose(out_eval, ref, atol=1e-6), "eval-mode mismatch vs reference"

    # Train-mode: every element is either dropped (0) or a 1/(1-p)-scaled survivor.
    scaled = ref / (1.0 - DROPOUT_P)
    ok = jnp.isclose(out_train, 0.0, atol=1e-6) | jnp.isclose(out_train, scaled, atol=1e-5)
    assert bool(jnp.all(ok)), "train-mode values are not {0, scaled} as dropout requires"

    print("KERNEL_OK")
</pallas_src>

<mosaic_0001>
module attributes {stable_mosaic.version = 11 : i64} {
  func.func @kernel(%arg0: i32, %arg1: i32, %arg2: memref<1x2x128xf32, #tpu.memory_space<vmem>>, %arg3: memref<2x128xf32, #tpu.memory_space<vmem>>, %arg4: memref<1x2x128xi32, #tpu.memory_space<vmem>>, %arg5: memref<1x2x128xf32, #tpu.memory_space<vmem>>) attributes {dimension_semantics = [#tpu.dimension_semantics<parallel>, #tpu.dimension_semantics<parallel>], iteration_bounds = array<i64: 1, 2>, scalar_prefetch = 0 : i64, scratch_operands = 0 : i64, tpu.core_type = #tpu.core_type<tc>, window_params = [{transform_indices = @transform_0, window_bounds = array<i64: 1, 2, 128>}, {transform_indices = @transform_1, window_bounds = array<i64: 2, 128>}, {transform_indices = @transform_2, window_bounds = array<i64: 1, 2, 128>}, {transform_indices = @transform_3, window_bounds = array<i64: 1, 2, 128>}]} {
    %c0 = arith.constant 0 : index
    %c0_0 = arith.constant 0 : index
    %c0_1 = arith.constant 0 : index
    %0 = vector.load %arg2[%c0, %c0_0, %c0_1] : memref<1x2x128xf32, #tpu.memory_space<vmem>>, vector<1x2x128xf32>
    %1 = vector.shape_cast %0 : vector<1x2x128xf32> to vector<2x128xf32>
    %c0_2 = arith.constant 0 : index
    %c0_3 = arith.constant 0 : index
    %2 = vector.load %arg3[%c0_2, %c0_3] : memref<2x128xf32, #tpu.memory_space<vmem>>, vector<2x128xf32>
    %3 = arith.addf %1, %2 : vector<2x128xf32>
    %c0_4 = arith.constant 0 : index
    %c0_5 = arith.constant 0 : index
    %c0_6 = arith.constant 0 : index
    %4 = vector.load %arg4[%c0_4, %c0_5, %c0_6] : memref<1x2x128xi32, #tpu.memory_space<vmem>>, vector<1x2x128xi32>
    %5 = vector.shape_cast %4 : vector<1x2x128xi32> to vector<2x128xi32>
    %c-1717986918_i32 = arith.constant -1717986918 : i32
    %6 = vector.broadcast %c-1717986918_i32 : i32 to vector<2x128xi32>
    %7 = arith.cmpi sge, %5, %6 : vector<2x128xi32>
    %cst = arith.constant 1.11111116 : f32
    %8 = vector.broadcast %cst : f32 to vector<2x128xf32>
    %9 = arith.mulf %3, %8 : vector<2x128xf32>
    %cst_7 = arith.constant 0.000000e+00 : f32
    %10 = vector.broadcast %cst_7 : f32 to vector<2x128xf32>
    %11 = arith.select %7, %9, %10 : vector<2x128xi1>, vector<2x128xf32>
    %c0_8 = arith.constant 0 : index
    %c0_9 = arith.constant 0 : index
    %c0_10 = arith.constant 0 : index
    %12 = vector.load %arg5[%c0_8, %c0_9, %c0_10] : memref<1x2x128xf32, #tpu.memory_space<vmem>>, vector<1x2x128xf32>
    %13 = vector.shape_cast %12 : vector<1x2x128xf32> to vector<2x128xf32>
    %14 = vector.shape_cast %11 : vector<2x128xf32> to vector<1x2x128xf32>
    tpu.vector_store %arg5[%c0_8, %c0_9, %c0_10], %14 {strides = array<i32>} : memref<1x2x128xf32, #tpu.memory_space<vmem>>, vector<1x2x128xf32>,
    return
  }
  func.func @transform_0(%arg0: i32, %arg1: i32) -> (i32, i32, i32) {
    %c0_i32 = arith.constant 0 : i32
    %c0_i32_0 = arith.constant 0 : i32
    return %arg1, %arg0, %c0_i32 : i32, i32, i32
  }
  func.func @transform_1(%arg0: i32, %arg1: i32) -> (i32, i32) {
    %c0_i32 = arith.constant 0 : i32
    %c0_i32_0 = arith.constant 0 : i32
    return %arg0, %c0_i32 : i32, i32
  }
  func.func @transform_2(%arg0: i32, %arg1: i32) -> (i32, i32, i32) {
    %c0_i32 = arith.constant 0 : i32
    %c0_i32_0 = arith.constant 0 : i32
    return %arg1, %arg0, %c0_i32 : i32, i32, i32
  }
  func.func @transform_3(%arg0: i32, %arg1: i32) -> (i32, i32, i32) {
    %c0_i32 = arith.constant 0 : i32
    %c0_i32_0 = arith.constant 0 : i32
    return %arg1, %arg0, %c0_i32 : i32, i32, i32
  }
}

</mosaic_0001>

<bundles_post_ra>
// kernel: tpu_custom_call.1
= control target key start
LH: loop header
LB: loop body
LE: loop exit
PB: predicated region body
PF: predicated region fallthrough
CT: control target
= control target key end

     0   :  { %8 = vsyncpa [#allocation3], 0  ;;  %s874_s0 = inlined_call_operand.hbm [shape: f32[2,2,128], index: 0, kind: input, shape index: {}]   ;;  %s875_s1 = inlined_call_operand.hbm [shape: f32[2,128], index: 1, kind: input, shape index: {}]   ;;  %s876_s2 = inlined_call_operand.hbm [shape: s32[2,2,128], index: 2, kind: input, shape index: {}]   ;;  %s877_s3 = inlined_call_operand.hbm [shape: f32[2,2,128], index: 3, kind: output, shape index: {}]  }
   0x1   :  { %10 = vsyncpa [#allocation3 + $0x1], 0 }
   0x2   :  { %11 = vsyncpa [#allocation6], 0 }
   0x3   :  { %12 = vsyncpa [#allocation4], 0 }
   0x4   :  { %14 = vsyncpa [#allocation4 + $0x1], 0  ;;  %s688_s12 = smov 0   ;;  %s690_s13 = smov 0  }
   0x5   :  { %s692_s14 = smov 0   ;;  %s694_s15 = smov 0  }
   0x6   :  { %s696_s16 = smov 0   ;;  %s698_s17 = smov 0  }
   0x7 LB: > { %s29_s18 = sadd.s32 1, %s658_s16  ;;  %s41_s19 = sadd.s32 1, %s650_s14  ;;  %s662_s17 = sphi %s698_s17, %s20_s17   ;;  %s658_s16 = sphi %s696_s16, %s898_s16   ;;  %s654_s15 = sphi %s694_s15, %s897_s15   ;;  %s650_s14 = sphi %s692_s14, %s896_s14   ;;  %s646_s13 = sphi %s690_s13, %s895_s13   ;;  %s642_s12 = sphi %s688_s12, %s894_s12  }
   0x8   : > { %p30_p0 = scmp.ge.s32.totalorder %s29_s18, 2  ;;  %p48_p1 = scmp.ne.s32.totalorder %s650_s14, %s646_s13 }
   0x9   : > { %p49_p2 = scmp.eq.s32.totalorder %s662_s17, 0  ;;  %p440_p5 = scmp.lt.s32.totalorder %s662_s17, 2 }
   0xa   : > { %s900_s18 = smov (%p30_p0, %s29_s18), 0  ;;  %s173_s21 = sand.u32 1, %s662_s17  }
   0xb   : > { %p50_p4 = por %p49_p2, %p48_p1  ;;  %s36_s20 = ssub.s32 %s658_s16, %s900_s18 }
   0xc   : > { %p39_p6 = scmp.eq.s32.totalorder %s36_s20, 0  ;;  %s175_s22 = sand.u32 1, %s650_s14  }
   0xd   : > { %s402_s23 = sshll.u32 %s658_s16, 5  ;;  %s738_s25 = sshll.u32 %s175_s22, 1 }
   0xe   : > { %s736_s24 = scalar_select %p39_p6, %s650_s14, %s41_s19  }
   0xf   : > { %s183_s28 = scalar_lea.hbm %s874_s0, %s402_s23  ;;  %p745_p7 = pnand %p440_p5, %p50_p4 }
  0x10   : > { %s177_s30 = scalar_lea.vmem [#allocation2], %s738_s25  ;;  %s750_s5 = scalar_lea.sflag [#allocation3], %s173_s21 }
  0x11   : > { %s185_s4 = sshll.u32 %s177_s30, 4  ;;  %p494_p8 = pneg %p745_p7  ;;  %s186_s4 = int_to_ptr.vmem [resolvable:$true] %s185_s4 }
  0x12   : > { %s505_s6 = scalar_lea.vmem %s186_s4, 32  ;;  %s664_s7 = smov [#allocation2]  }
  0x13   : > { %p506_p9 = scmp.ne.s32.totalorder %s186_s4, %s505_s6  ;;  %s510_s8 = sshll.u32 %s664_s7, 4  ;;  %s511_s8 = int_to_ptr.vmem [resolvable:$false] %s510_s8 }
  0x14   : > { %s512_s9 = scalar_lea.vmem %s511_s8, 64  ;;  %p513_p12 = scmp.lt.s32.totalorder %s186_s4, %s511_s8 }
  0x15   : > { %p508_p10 = pnand %p506_p9, %p494_p8  ;;  %p514_p13 = scmp.lt.s32.totalorder %s512_s9, %s505_s6 }
  0x17   : > { %p509_p11 = pneg %p508_p10  ;;  %p515_p0 = por %p514_p13, %p513_p12 }
  0x19   : > { %p516_p2 = pnand %p515_p0, %p509_p11 }
  0x1b   : > { %519 = shalt.err (!%p516_p2)
}
  0x1c   : > { %431 = dma.hbm_to_vmem [thread:$0]  (!%p745_p7), %s183_s28, 32, %s186_s4, %s750_s5  }
  0x1d   : > { %s761_s10 = sadd.s32 4294967295, %s662_s17   ;;  %s397_s11 = sadd.s32 4294967294, %s662_s17  }
  0x1e   : > { %p54_p4 = scmp.ne.s32.totalorder %s646_s13, %s642_s12  ;;  %p878_p5 = scmp.eq.s32.totalorder %s761_s10, 0 }
  0x1f   : > { %p134_p6 = scmp.eq.s32.totalorder %s761_s10, 1  ;;  %p140_p9 = scmp.eq.s32.totalorder %s397_s11, 1 }
  0x20   : > { %p398_p10 = scmp.ge.s32.totalorder %s662_s17, 1  ;;  %p771_p11 = por %p878_p5, %p54_p4 }
  0x21   : > { %p778_p12 = por %p134_p6, %p48_p1  ;;  %p782_p13 = por %p140_p9, %p54_p4 }
  0x22   : > { %s882_s19 = scalar_select %p771_p11, 1, 0 }
  0x23   : > { %s883_s20 = scalar_select %p778_p12, 1, 0 }
  0x24   : > { %s884_s21 = scalar_select %p782_p13, 1, 0 }
  0x25   : > { %p147_p0 = scmp.lt.s32.totalorder %s662_s17, 3  ;;  %s202_s27 = scalar_lea.hbm %s876_s2, %s402_s23 }
  0x26   : > { %s665_s30 = smov [#allocation5]   ;;  %s196_s6 = scalar_lea.vmem [#allocation7], %s738_s25 }
  0x27   : > { %p792_p2 = pnand %p398_p10, %p147_p0  ;;  %s162_s4 = sshll.u32 %s665_s30, 4  ;;  %s163_s4 = int_to_ptr.vmem [resolvable:$true] %s162_s4 }
  0x28   : > { %s204_s7 = sshll.u32 %s196_s6, 4  ;;  %s666_s9 = smov [#allocation7]   ;;  %s205_s7 = int_to_ptr.vmem [resolvable:$true] %s204_s7 }
  0x29   : > { %s533_s8 = scalar_lea.vmem %s205_s7, 32  ;;  %s538_s23 = sshll.u32 %s666_s9, 4  ;;  %s539_s23 = int_to_ptr.vmem [resolvable:$false] %s538_s23 }
  0x2a   : > { %p534_p4 = scmp.ne.s32.totalorder %s205_s7, %s533_s8  ;;  %s540_s11 = scalar_lea.vmem %s539_s23, 64 }
  0x2b   : > { %p541_p10 = scmp.lt.s32.totalorder %s205_s7, %s539_s23  ;;  %p542_p0 = scmp.lt.s32.totalorder %s540_s11, %s533_s8 }
  0x2c   : > { %p536_p6 = pnand %p534_p4, %p494_p8 }
  0x2d   : > { %p543_p3 = por %p542_p0, %p541_p10 }
  0x2e   : > { %p537_p9 = pneg %p536_p6 }
  0x30   : > { %p544_p5 = pnand %p543_p3, %p537_p9 }
  0x32   : > { %547 = shalt.err (!%p544_p5)
}
  0x33   : > { %434 = dma.hbm_to_vmem [thread:$0]  (!%p745_p7), %s202_s27, 32, %s205_s7, %s750_s5  }
  0x34   : > { %p886_p1 = scmp.eq.s32.totalorder %s761_s10, 0  ;;  %p887_p8 = pneg %p792_p2 }
  0x35   : > { %s559_s25 = scalar_lea.vmem %s163_s4, 32  ;;  %p567_p0 = scmp.lt.s32.totalorder %s163_s4, %s163_s4 }
  0x36   : > { %p425_p4 = pnand %p887_p8, %p886_p1  ;;  %p560_p13 = scmp.ne.s32.totalorder %s163_s4, %s559_s25 }
  0x37   : > { %p568_p10 = scmp.lt.s32.totalorder %s559_s25, %s559_s25 }
  0x38   : > { %p550_p6 = pneg %p425_p4 }
  0x39   : > { %p569_p3 = por %p568_p10, %p567_p0 }
  0x3a   : > { %p562_p12 = pnand %p560_p13, %p550_p6 }
  0x3c   : > { %p563_p11 = pneg %p562_p12 }
  0x3e   : > { %p570_p5 = pnand %p569_p3, %p563_p11 }
  0x40   : > { %573 = shalt.err (!%p570_p5)
}
  0x41   : > { %427 = dma.hbm_to_vmem [thread:$0]  (!%p425_p4), %s875_s1, 32, %s163_s4, [#allocation6]  }
  0x42   : > { %213 = sbr.rel (%p792_p2) target bundleno = 103 (0x67), region = 32  ;;  %s215_s5 = sand.u32 (!%p792_p2), 1, %s761_s10  }
  0x43   : > { %s217_s26 = sand.u32 (!%p792_p2), 1, %s646_s13   ;;  %s216_s30 = scalar_lea.sflag (!%p792_p2), [#allocation3], %s215_s5 }
  0x44   : > { %s406_s27 = sshll.u32 (!%p792_p2), %s217_s26, 1  ;;  %p888_p7 = scmp.ne.s32.totalorder (!%p792_p2), %s882_s19, 0 }
  0x45   : > { %s219_s6 = scalar_lea.vmem (!%p792_p2), [#allocation2], %s406_s27 }
  0x47   : > { %625 = dma.done.wait (%p888_p7), %s216_s30, 32  }
  0x48   : > { %627 = vsyncadd (%p888_p7), %s216_s30, 4294967264  ;;  %p889_p11 = scmp.eq.s32.totalorder %s761_s10, 0 }
  0x4a   : > { %629 = dma.done.wait (%p889_p11), [#allocation6], 32   ;;  %p890_p12 = pmov %p889_p11 }
  0x4b   : > { %s232_s28 = scalar_lea.vmem [#allocation7], %s406_s27 }
  0x4c   : > { %631 = vsyncadd (%p890_p12), [#allocation6], 4294967264 }
  0x4d   : > { %633 = dma.done.wait (%p888_p7), %s216_s30, 32  }
  0x4e   : > { %635 = vsyncadd (%p888_p7), %s216_s30, 4294967264  ;;  %v260_v0 = vld [vmem:[%s219_s6] sm:$0x3]  ;;  %v261_v1 = vld [vmem:[#allocation5] sm:$0x3]  ;;  %s259_s4 = scalar_lea.vmem [#allocation8], %s406_s27 }
  0x4f   : > { %v263_v2 = vld [vmem:[%s232_s28] sm:$0x3]  ;;  %v262_v3 = vadd.f32 %v261_v1, %v260_v0  ;;  %s283_s7 = sshll.u32 %s259_s4, 4  ;;  %s411_s8 = sshll.u32 %s654_s15, 5  ;;  %s830_s7 = int_to_ptr.vmem [resolvable:$true] %s283_s7 }
  0x50   : > { %vm264_vm0 = vcmp.ge.s32.totalorder %v263_v2, 2576980378  ;;  %s281_s19 = scalar_lea.hbm %s877_s3, %s411_s8  ;;  %s269_s23 = scalar_lea.sflag [#allocation4], %s217_s26 }
  0x51   : > { %v265_v4 = vmul.f32 1.1111112, %v262_v3  ;;  %s574_s11 = scalar_lea.vmem %s830_s7, 32  ;;  %p891_p2 = scmp.ne.s32.totalorder %s883_s20, 0 }
  0x52   : > { %p575_p13 = scmp.ne.s32.totalorder %s830_s7, %s574_s11  ;;  %s667_s15 = smov [#allocation8]  }
  0x53   : > { %v266_v5 = vsel %vm264_vm0, %v265_v4, 0.0  ;;  %s578_s25 = sshll.u32 %s667_s15, 4  ;;  %s579_s25 = int_to_ptr.vmem [resolvable:$false] %s578_s25 }
  0x54   : > { %267 = vst [vmem:[%s259_s4] sm:$0x3] %v266_v5  ;;  %p576_p1 = pnand %p575_p13, %p891_p2  ;;  %s580_s29 = scalar_lea.vmem %s579_s25, 64 }
  0x55   : > { %p581_p8 = scmp.lt.s32.totalorder %s830_s7, %s579_s25  ;;  %p582_p4 = scmp.lt.s32.totalorder %s580_s29, %s574_s11 }
  0x56   : > { %p577_p9 = pneg %p576_p1 }
  0x57   : > { %p583_p6 = por %p582_p4, %p581_p8 }
  0x59   : > { %p584_p0 = pnand %p583_p6, %p577_p9 }
  0x5b   : > { %587 = shalt.err (!%p584_p0)
}
  0x5c   : > { %s588_s22 = scalar_lea.hbm %s281_s19, 32  ;;  %s592_s27 = scalar_lea.hbm %s877_s3, 64 }
  0x5d   : > { %p589_p10 = scmp.ne.s32.totalorder %s281_s19, %s588_s22  ;;  %p593_p7 = scmp.lt.s32.totalorder %s281_s19, %s877_s3 }
  0x5e   : > { %p594_p11 = scmp.lt.s32.totalorder %s592_s27, %s588_s22 }
  0x5f   : > { %p590_p3 = pnand %p589_p10, %p891_p2 }
  0x60   : > { %p595_p12 = por %p594_p11, %p593_p7 }
  0x61   : > { %p591_p5 = pneg %p590_p3 }
  0x63   : > { %p596_p13 = pnand %p595_p12, %p591_p5 }
  0x65   : > { %599 = shalt.err (!%p596_p13)
}
  0x66   : > { %422 = dma.vmem_to_hbm [thread:$0]  (%p891_p2), %s830_s7, 32, %s281_s19, %s269_s23  }
  0x67 PF: > { %s295_s28 = sand.u32 1, %s642_s12   ;;  %p892_p1 = scmp.ne.s32.totalorder %s884_s21, 0 }
  0x68   : > { %p893_p9 = scmp.ge.s32.totalorder %s662_s17, 2  ;;  %s296_s4 = scalar_lea.sflag [#allocation4], %s295_s28 }
  0x6a   : > { %p436_p8 = pnand %p893_p9, %p892_p1 }
  0x6c   : > { %p437_p4 = pneg %p436_p8 }
  0x6e   : > { %637 = dma.done.wait (%p437_p4), %s296_s4, 32  }
  0x6f   : > { %639 = vsyncadd (%p437_p4), %s296_s4, 4294967264  ;;  %s20_s17 = sadd.s32 1, %s662_s17   ;;  %s894_s12 = smov %s646_s13 }
  0x70   : > { %p17_p6 = scmp.ge.s32.totalorder %s20_s17, 4   ;;  %s895_s13 = smov %s650_s14 }
  0x71   : > { %s896_s14 = smov %s736_s24  ;;  %s897_s15 = smov %s658_s16 }
  0x72   : > { %s898_s16 = smov %s900_s18  ;;  %19 = sbr.rel (!%p17_p6) target bundleno = 7 (0x7), region = 93 }
  0x77   :  { %301 = vsyncpa [#allocation3], 1 }
  0x78   :  { %303 = vsyncpa [#allocation3 + $0x1], 1 }
  0x79   :  { %304 = vsyncpa [#allocation6], 1 }
  0x7a   :  { %305 = vsyncpa [#allocation4], 1 }
  0x7b   :  { %307 = vsyncpa [#allocation4 + $0x1], 1 }

</bundles_post_ra>
